<compile_context>
chip_gen: v7x
topology: tpu7x:2x2x1
jax: 0.10.0
libtpu: 0.0.40
codegen_flags: <defaults>
</compile_context>

<pallas_src>
import functools

import jax
import jax.numpy as jnp
from jax import lax
from jax.experimental import pallas as pl
from jax.experimental.pallas import tpu as pltpu


# ----------------------------- VMEM / tiling config --------------------------

def _vmem_config():
    """Per-generation scoped-VMEM limit + tiled-buffer budget.

    v5e/v6e: 128 MiB physical VMEM per core -> ~96-100 MiB limit; v7x: 64 MiB
    -> 48 MiB limit. The tiled-buffer budget is ~60% of the limit so Mosaic
    internal scratch / a double-buffer fallback of the weights cannot blow it.
    """
    try:
        phys = getattr(pltpu.get_tpu_info(), "vmem_capacity_bytes", None)
    except Exception:
        phys = None
    if not phys:
        phys = 64 * 1024 * 1024                       # conservative: assume v7x
    limit = min((phys * 3) // 4, 100 * 1024 * 1024)
    return int(limit), int(limit * 6 // 10)


def _spec(block_shape, index_map, *, buffers=2):
    """BlockSpec; buffers=1 requests single-buffering for grid-invariant blocks
    (their second pipeline buffer is pure VMEM waste).  Falls back to the
    default double-buffered spec if this JAX build has no `pipeline_mode`."""
    if buffers != 2:
        try:
            return pl.BlockSpec(block_shape, index_map,
                                pipeline_mode=pl.Buffered(buffers))
        except Exception:
            pass
    return pl.BlockSpec(block_shape, index_map)


def _round_rows(rows, hw):
    """Row tile: a multiple of 128 (lane/sublane friendly, incl. bf16 packing)
    or the full HW extent (always legal: 'equal to the array dim')."""
    if rows >= hw or hw <= 128:
        return hw
    return max(128, (rows // 128) * 128)


def _choose_cout_tile(c):
    """Output-channel tile for the fused mid kernel: full C when small, else a
    256/128-wide slab (matches the 256-wide v6e/v7x MXU, 128-wide on v5e)."""
    if c <= 512:
        return c
    for ct in (256, 128):
        if c % ct == 0:
            return ct
    return c


def _choose_row_tiles(hw, c, ct, budget):
    """VMEM-accounted row tiles (conservatively assumes the weight keeps two
    pipeline buffers even when single buffering was requested)."""
    # mid_fuse per row: x bf16 (2 bufs) 4c | out f32 (2 bufs) 8ct | sc1 f32 8 |
    #                   in-kernel f32 matmul/ReLU temporaries ~8ct.
    per_row_mid = 4 * c + 16 * ct + 8
    fixed_mid = 2 * 2 * c * ct + 16 * ct              # weight (2 bufs) + bias/gap
    thw_mid = _round_rows(max(0, budget - fixed_mid) // per_row_mid, hw)

    # gap per row: x bf16 (2 bufs) 4c + masked bf16 copy 2c.
    per_row_gap = 6 * c
    fixed_gap = 2 * 2 * c * c + 16 * c                # (C,C) weight + bias/out/acc
    thw_gap = _round_rows(max(0, budget - fixed_gap) // per_row_gap, hw)
    return thw_mid, thw_gap


# ----------------------------- Pallas kernels --------------------------------

def gap_kernel(x_ref, w_ref, b_ref, o_ref, acc_ref, *, hw, inv_hw, ragged):
    """Tiled global-average-pool + 1x1 conv + bias + ReLU.

    Grid = (batch, hw_tiles); the hw axis reduces into a f32 scratch
    accumulator via a ones-vector matmul on the MXU; the (1,C)x(C,C) matmul +
    bias + ReLU epilogue runs on the last tile.
      x_ref: (1, THWg, C) bf16   w_ref: (C, C) bf16   b_ref: (1, C) f32
      o_ref: (1, 1, C)   f32     acc_ref: (1, C) f32 scratch
    """
    t = pl.program_id(1)

    @pl.when(t == 0)
    def _():
        acc_ref[...] = jnp.zeros_like(acc_ref)

    x = x_ref[0]                                       # (THWg, C) bf16
    if ragged:                                         # static: hw % tile != 0
        tile = x.shape[0]
        row = lax.broadcasted_iota(jnp.int32, (tile, 1), 0) + t * tile
        x = jnp.where(row < hw, x, jnp.zeros_like(x))  # mask undefined tail rows
    ones = jnp.ones((1, x.shape[0]), x.dtype)
    acc_ref[...] += jnp.dot(ones, x, preferred_element_type=jnp.float32)

    @pl.when(t == pl.num_programs(1) - 1)
    def _():
        mean = (acc_ref[...] * inv_hw).astype(w_ref.dtype)              # (1, C)
        y = jnp.dot(mean, w_ref[...], preferred_element_type=jnp.float32)
        o_ref[0] = jnp.maximum(y + b_ref[...], 0.0)


def mid_fuse_kernel(x_ref, w_ref, b_ref, s_ref, g_ref, o_ref):
    """Fused mid-branch 1x1 conv + ReLU + final fuse: o = scale1*relu(x@w+b)+gap.

      x_ref: (1, THW, C)  bf16   w_ref: (C, CT) bf16   b_ref: (1, CT) f32
      s_ref: (1, THW, 1)  f32    g_ref: (1, 1, CT) f32  o_ref: (1, THW, CT) f32
    """
    y = jnp.dot(x_ref[0], w_ref[...], preferred_element_type=jnp.float32)
    y = jnp.maximum(y + b_ref[...], 0.0)
    o_ref[0] = s_ref[0] * y + g_ref[0]


# ----------------------------- XLA-side pieces -------------------------------
# Cout=1 pyramid convs + bilinear upsamples: tiny maps, kept on XLA (an MXU
# matmul with a single output lane is strictly worse).

def conv_relu(x_nhwc, w_oihw, b, stride, pad, add=None):
    """Conv2d (PyTorch OIHW weights) + bias + ReLU [+ residual add], NHWC."""
    w = jnp.transpose(w_oihw, (2, 3, 1, 0)).astype(x_nhwc.dtype)       # HWIO
    y = lax.conv_general_dilated(
        x_nhwc, w, window_strides=(stride, stride),
        padding=[(pad, pad), (pad, pad)],
        dimension_numbers=('NHWC', 'HWIO', 'NHWC'),
        preferred_element_type=jnp.float32)
    y = jnp.maximum(y + b.reshape(1, 1, 1, -1).astype(jnp.float32), 0.0)
    return y if add is None else y + add


def bilinear_upsample(x, out_h, out_w):
    """PyTorch nn.Upsample(mode='bilinear', align_corners=False). x: (N,H,W,C)."""
    n, h, w, c = x.shape

    def src(out_size, in_size):
        i = jnp.arange(out_size, dtype=jnp.float32)
        s = jnp.maximum((i + 0.5) * (in_size / out_size) - 0.5, 0.0)
        i0 = jnp.floor(s).astype(jnp.int32)
        i1 = jnp.minimum(i0 + 1, in_size - 1)
        return i0, i1, s - i0.astype(jnp.float32)

    r0, r1, wr = src(out_h, h)
    c0, c1, wc = src(out_w, w)
    x0, x1 = x[:, r0], x[:, r1]
    wc = wc[None, None, :, None]
    top = x0[:, :, c0] * (1.0 - wc) + x0[:, :, c1] * wc
    bot = x1[:, :, c0] * (1.0 - wc) + x1[:, :, c1] * wc
    wr = wr[None, :, None, None]
    return top * (1.0 - wr) + bot * wr


# ----------------------------- FPA forward -----------------------------------

def fpa_forward(x_nchw, params):
    n, c, h, w = x_nchw.shape
    hw = h * w

    # One fused NCHW->NHWC transpose + bf16 cast; reused by the pyramid's first
    # conv and (flattened, for free) by both Pallas kernels.
    x_bf = jnp.transpose(x_nchw, (0, 2, 3, 1)).astype(jnp.bfloat16)    # (N,H,W,C)
    x_flat = x_bf.reshape(n, hw, c)

    # --- pyramid branch (Cout = 1) on XLA ---
    s1 = conv_relu(x_bf, params['d1_w'], params['d1_b'], stride=2, pad=3)
    s2 = conv_relu(s1, params['d2_w'], params['d2_b'], stride=2, pad=2)
    s3 = conv_relu(s2, params['d3_w'], params['d3_b'], stride=2, pad=1)

    sc3 = conv_relu(s3, params['s3_w'], params['s3_b'], stride=1, pad=1)
    sc3 = bilinear_upsample(sc3, h // 4, w // 4)
    sc2 = conv_relu(s2, params['s2_w'], params['s2_b'], stride=1, pad=2, add=sc3)
    sc2 = bilinear_upsample(sc2, h // 2, w // 2)
    sc1 = conv_relu(s1, params['s1_w'], params['s1_b'], stride=1, pad=3, add=sc2)
    sc1 = bilinear_upsample(sc1, h, w)                                 # (N,H,W,1) f32
    sc1_flat = sc1.reshape(n, hw, 1)

    # --- channel-wide 1x1-conv paths on the MXU (bf16 operands, f32 accumulate)
    ct = _choose_cout_tile(c)
    vmem_limit, budget = _vmem_config()
    thw_mid, thw_gap = _choose_row_tiles(hw, c, ct, budget)
    n_row, n_gap, n_ct = pl.cdiv(hw, thw_mid), pl.cdiv(hw, thw_gap), pl.cdiv(c, ct)

    w_gap = jnp.transpose(params['gap_w'][:, :, 0, 0]).astype(jnp.bfloat16)  # (Cin,Cout)
    w_mid = jnp.transpose(params['mid_w'][:, :, 0, 0]).astype(jnp.bfloat16)
    b_gap = params['gap_b'].reshape(1, c).astype(jnp.float32)
    b_mid = params['mid_b'].reshape(1, c).astype(jnp.float32)

    # GAP branch: tiled reduction + 1x1 conv + ReLU.  (Bilinear upsample of a
    # 1x1 map is a constant broadcast, handled inside the fuse kernel.)
    gap = pl.pallas_call(
        functools.partial(gap_kernel, hw=hw, inv_hw=1.0 / float(hw),
                          ragged=(hw % thw_gap != 0)),
        out_shape=jax.ShapeDtypeStruct((n, 1, c), jnp.float32),
        grid=(n, n_gap),
        in_specs=[
            pl.BlockSpec((1, thw_gap, c), lambda b, t: (b, t, 0)),
            _spec((c, c), lambda b, t: (0, 0), buffers=1),   # grid-invariant weight
            _spec((1, c), lambda b, t: (0, 0), buffers=1),   # grid-invariant bias
        ],
        out_specs=pl.BlockSpec((1, 1, c), lambda b, t: (b, 0, 0)),
        scratch_shapes=[pltpu.VMEM((1, c), jnp.float32)],
        compiler_params=pltpu.CompilerParams(
            dimension_semantics=("parallel", "arbitrary"),
            vmem_limit_bytes=vmem_limit),
    )(x_flat, w_gap, b_gap)

    # Fused: mid 1x1 conv + ReLU + (scale1 * mid + gap); ragged last row tile is
    # handled by Pallas' masked tail stores (no pad / slice round trips).
    wb = 1 if n_ct == 1 else 2          # single-buffer the weight/bias iff constant
    out_flat = pl.pallas_call(
        mid_fuse_kernel,
        out_shape=jax.ShapeDtypeStruct((n, hw, c), jnp.float32),
        grid=(n, n_row, n_ct),
        in_specs=[
            pl.BlockSpec((1, thw_mid, c), lambda b, t, j: (b, t, 0)),  # resident over j
            _spec((c, ct), lambda b, t, j: (0, j), buffers=wb),
            _spec((1, ct), lambda b, t, j: (0, j), buffers=wb),
            pl.BlockSpec((1, thw_mid, 1), lambda b, t, j: (b, t, 0)),
            pl.BlockSpec((1, 1, ct), lambda b, t, j: (b, 0, j)),
        ],
        out_specs=pl.BlockSpec((1, thw_mid, ct), lambda b, t, j: (b, t, j)),
        compiler_params=pltpu.CompilerParams(
            dimension_semantics=("parallel", "parallel", "arbitrary"),
            vmem_limit_bytes=vmem_limit),
    )(x_flat, w_mid, b_mid, sc1_flat, gap)

    out = out_flat.reshape(n, h, w, c)
    return jnp.transpose(out, (0, 3, 1, 2))                            # back to NCHW


# ----------------------------- parameters ------------------------------------

def init_params(key, c):
    ks = jax.random.split(key, 16)

    def rnd(k, shape, fan_in):
        return jax.random.normal(k, shape, jnp.float32) / jnp.sqrt(float(fan_in))

    return {
        'gap_w': rnd(ks[0], (c, c, 1, 1), c),      'gap_b': rnd(ks[1], (c,), c),
        'mid_w': rnd(ks[2], (c, c, 1, 1), c),      'mid_b': rnd(ks[3], (c,), c),
        'd1_w':  rnd(ks[4], (1, c, 7, 7), c * 49), 'd1_b':  rnd(ks[5], (1,), c * 49),
        'd2_w':  rnd(ks[6], (1, 1, 5, 5), 25),     'd2_b':  rnd(ks[7], (1,), 25),
        'd3_w':  rnd(ks[8], (1, 1, 3, 3), 9),      'd3_b':  rnd(ks[9], (1,), 9),
        's1_w':  rnd(ks[10], (1, 1, 7, 7), 49),    's1_b':  rnd(ks[11], (1,), 49),
        's2_w':  rnd(ks[12], (1, 1, 5, 5), 25),    's2_b':  rnd(ks[13], (1,), 25),
        's3_w':  rnd(ks[14], (1, 1, 3, 3), 9),     's3_b':  rnd(ks[15], (1,), 9),
    }


if __name__ == "__main__":
    key = jax.random.PRNGKey(0)
    k_x, k_p = jax.random.split(key)
    N, C, H, W = 2, 4, 16, 16
    x = jax.random.normal(k_x, (N, C, H, W), jnp.float32)
    params = init_params(k_p, C)

    fwd = jax.jit(functools.partial(fpa_forward, params=params))
    out = fwd(x)
    jax.block_until_ready(out)
    assert out.shape == (N, C, H, W) and out.dtype == jnp.float32
    print("KERNEL_OK")
</pallas_src>

<mosaic_0001>
module attributes {stable_mosaic.version = 11 : i64} {
  func.func @gap_kernel(%arg0: i32, %arg1: i32, %arg2: memref<1x256x4xbf16, #tpu.memory_space<vmem>>, %arg3: memref<4x4xbf16, #tpu.memory_space<vmem>>, %arg4: memref<1x4xf32, #tpu.memory_space<vmem>>, %arg5: memref<1x1x4xf32, #tpu.memory_space<vmem>>, %arg6: memref<1x4xf32, #tpu.memory_space<vmem>>) attributes {dimension_semantics = [#tpu.dimension_semantics<parallel>, #tpu.dimension_semantics<arbitrary>], iteration_bounds = array<i64: 2, 1>, scalar_prefetch = 0 : i64, scratch_operands = 1 : i64, tpu.core_type = #tpu.core_type<tc>, window_params = [{transform_indices = @transform_0, window_bounds = array<i64: 1, 256, 4>}, {pipeline_mode = #tpu.pipeline_mode<synchronous>, transform_indices = @transform_1, window_bounds = array<i64: 4, 4>}, {pipeline_mode = #tpu.pipeline_mode<synchronous>, transform_indices = @transform_2, window_bounds = array<i64: 1, 4>}, {transform_indices = @transform_3, window_bounds = array<i64: 1, 1, 4>}]} {
    %c0_i32 = arith.constant 0 : i32
    %0 = arith.cmpi eq, %arg1, %c0_i32 : i32
    %1 = arith.extui %0 : i1 to i32
    %c0_i32_0 = arith.constant 0 : i32
    %2 = arith.cmpi ne, %1, %c0_i32_0 : i32
    scf.if %2 {
      %cst_10 = arith.constant 0.000000e+00 : f32
      %13 = vector.broadcast %cst_10 : f32 to vector<1x4xf32>
      %c0_11 = arith.constant 0 : index
      %c0_12 = arith.constant 0 : index
      %14 = vector.load %arg6[%c0_11, %c0_12] : memref<1x4xf32, #tpu.memory_space<vmem>>, vector<1x4xf32>
      tpu.vector_store %arg6[%c0_11, %c0_12], %13 {strides = array<i32>} : memref<1x4xf32, #tpu.memory_space<vmem>>, vector<1x4xf32>,
    } else {
    }
    %c0 = arith.constant 0 : index
    %c0_1 = arith.constant 0 : index
    %c0_2 = arith.constant 0 : index
    %3 = vector.load %arg2[%c0, %c0_1, %c0_2] : memref<1x256x4xbf16, #tpu.memory_space<vmem>>, vector<1x256x4xbf16>
    %4 = vector.shape_cast %3 : vector<1x256x4xbf16> to vector<256x4xbf16>
    %cst = arith.constant 1.000000e+00 : bf16
    %5 = vector.broadcast %cst : bf16 to vector<1x256xbf16>
    %c0_3 = arith.constant 0 : index
    %c0_4 = arith.constant 0 : index
    %6 = vector.load %arg6[%c0_3, %c0_4] : memref<1x4xf32, #tpu.memory_space<vmem>>, vector<1x4xf32>
    %cst_5 = arith.constant dense<0.000000e+00> : vector<1x4xf32>
    %7 = tpu.matmul %5, %4, %cst_5 {dimension_numbers = #tpu.dot_dimension_numbers<[1], [0], [0], [1], [0, 0, 1, 1], [], []>} : vector<1x256xbf16>, vector<256x4xbf16>, vector<1x4xf32> -> vector<1x4xf32>
    %8 = arith.addf %6, %7 : vector<1x4xf32>
    %c0_6 = arith.constant 0 : index
    %c0_7 = arith.constant 0 : index
    %9 = vector.load %arg6[%c0_6, %c0_7] : memref<1x4xf32, #tpu.memory_space<vmem>>, vector<1x4xf32>
    tpu.vector_store %arg6[%c0_6, %c0_7], %8 {strides = array<i32>} : memref<1x4xf32, #tpu.memory_space<vmem>>, vector<1x4xf32>,
    %c0_i32_8 = arith.constant 0 : i32
    %10 = arith.cmpi eq, %arg1, %c0_i32_8 : i32
    %11 = arith.extui %10 : i1 to i32
    %c0_i32_9 = arith.constant 0 : i32
    %12 = arith.cmpi ne, %11, %c0_i32_9 : i32
    scf.if %12 {
      %c0_10 = arith.constant 0 : index
      %c0_11 = arith.constant 0 : index
      %13 = vector.load %arg6[%c0_10, %c0_11] : memref<1x4xf32, #tpu.memory_space<vmem>>, vector<1x4xf32>
      %cst_12 = arith.constant 3.906250e-03 : f32
      %14 = vector.broadcast %cst_12 : f32 to vector<1x4xf32>
      %15 = arith.mulf %13, %14 : vector<1x4xf32>
      %16 = arith.truncf %15 : vector<1x4xf32> to vector<1x4xbf16>
      %c0_13 = arith.constant 0 : index
      %c0_14 = arith.constant 0 : index
      %17 = vector.load %arg3[%c0_13, %c0_14] : memref<4x4xbf16, #tpu.memory_space<vmem>>, vector<4x4xbf16>
      %cst_15 = arith.constant dense<0.000000e+00> : vector<1x4xf32>
      %18 = tpu.matmul %16, %17, %cst_15 {dimension_numbers = #tpu.dot_dimension_numbers<[1], [0], [0], [1], [0, 0, 1, 1], [], []>} : vector<1x4xbf16>, vector<4x4xbf16>, vector<1x4xf32> -> vector<1x4xf32>
      %c0_16 = arith.constant 0 : index
      %c0_17 = arith.constant 0 : index
      %19 = vector.load %arg4[%c0_16, %c0_17] : memref<1x4xf32, #tpu.memory_space<vmem>>, vector<1x4xf32>
      %20 = arith.addf %18, %19 : vector<1x4xf32>
      %cst_18 = arith.constant 0.000000e+00 : f32
      %21 = vector.broadcast %cst_18 : f32 to vector<1x4xf32>
      %22 = arith.maximumf %20, %21 : vector<1x4xf32>
      %c0_19 = arith.constant 0 : index
      %c0_20 = arith.constant 0 : index
      %c0_21 = arith.constant 0 : index
      %23 = vector.load %arg5[%c0_19, %c0_20, %c0_21] : memref<1x1x4xf32, #tpu.memory_space<vmem>>, vector<1x1x4xf32>
      %24 = vector.shape_cast %23 : vector<1x1x4xf32> to vector<1x4xf32>
      %25 = vector.shape_cast %22 : vector<1x4xf32> to vector<1x1x4xf32>
      tpu.vector_store %arg5[%c0_19, %c0_20, %c0_21], %25 {strides = array<i32>} : memref<1x1x4xf32, #tpu.memory_space<vmem>>, vector<1x1x4xf32>,
    } else {
    }
    return
  }
  func.func @transform_0(%arg0: i32, %arg1: i32) -> (i32, i32, i32) {
    %c0_i32 = arith.constant 0 : i32
    %c0_i32_0 = arith.constant 0 : i32
    return %arg0, %arg1, %c0_i32 : i32, i32, i32
  }
  func.func @transform_1(%arg0: i32, %arg1: i32) -> (i32, i32) {
    %c0_i32 = arith.constant 0 : i32
    %c0_i32_0 = arith.constant 0 : i32
    %c0_i32_1 = arith.constant 0 : i32
    return %c0_i32, %c0_i32_0 : i32, i32
  }
  func.func @transform_2(%arg0: i32, %arg1: i32) -> (i32, i32) {
    %c0_i32 = arith.constant 0 : i32
    %c0_i32_0 = arith.constant 0 : i32
    %c0_i32_1 = arith.constant 0 : i32
    return %c0_i32, %c0_i32_0 : i32, i32
  }
  func.func @transform_3(%arg0: i32, %arg1: i32) -> (i32, i32, i32) {
    %c0_i32 = arith.constant 0 : i32
    %c0_i32_0 = arith.constant 0 : i32
    %c0_i32_1 = arith.constant 0 : i32
    return %arg0, %c0_i32, %c0_i32_0 : i32, i32, i32
  }
}

module attributes {stable_mosaic.version = 11 : i64} {
  func.func @mid_fuse_kernel(%arg0: i32, %arg1: i32, %arg2: i32, %arg3: memref<1x256x4xbf16, #tpu.memory_space<vmem>>, %arg4: memref<4x4xbf16, #tpu.memory_space<vmem>>, %arg5: memref<1x4xf32, #tpu.memory_space<vmem>>, %arg6: memref<1x256x1xf32, #tpu.memory_space<vmem>>, %arg7: memref<1x1x4xf32, #tpu.memory_space<vmem>>, %arg8: memref<1x256x4xf32, #tpu.memory_space<vmem>>) attributes {dimension_semantics = [#tpu.dimension_semantics<parallel>, #tpu.dimension_semantics<parallel>, #tpu.dimension_semantics<arbitrary>], iteration_bounds = array<i64: 2, 1, 1>, scalar_prefetch = 0 : i64, scratch_operands = 0 : i64, tpu.core_type = #tpu.core_type<tc>, window_params = [{transform_indices = @transform_0, window_bounds = array<i64: 1, 256, 4>}, {pipeline_mode = #tpu.pipeline_mode<synchronous>, transform_indices = @transform_1, window_bounds = array<i64: 4, 4>}, {pipeline_mode = #tpu.pipeline_mode<synchronous>, transform_indices = @transform_2, window_bounds = array<i64: 1, 4>}, {transform_indices = @transform_3, window_bounds = array<i64: 1, 256, 1>}, {transform_indices = @transform_4, window_bounds = array<i64: 1, 1, 4>}, {transform_indices = @transform_5, window_bounds = array<i64: 1, 256, 4>}]} {
    %c0 = arith.constant 0 : index
    %c0_0 = arith.constant 0 : index
    %c0_1 = arith.constant 0 : index
    %0 = vector.load %arg3[%c0, %c0_0, %c0_1] : memref<1x256x4xbf16, #tpu.memory_space<vmem>>, vector<1x256x4xbf16>
    %1 = vector.shape_cast %0 : vector<1x256x4xbf16> to vector<256x4xbf16>
    %c0_2 = arith.constant 0 : index
    %c0_3 = arith.constant 0 : index
    %2 = vector.load %arg4[%c0_2, %c0_3] : memref<4x4xbf16, #tpu.memory_space<vmem>>, vector<4x4xbf16>
    %cst = arith.constant dense<0.000000e+00> : vector<256x4xf32>
    %3 = tpu.matmul %1, %2, %cst {dimension_numbers = #tpu.dot_dimension_numbers<[1], [0], [0], [1], [0, 0, 1, 1], [], []>} : vector<256x4xbf16>, vector<4x4xbf16>, vector<256x4xf32> -> vector<256x4xf32>
    %c0_4 = arith.constant 0 : index
    %c0_5 = arith.constant 0 : index
    %4 = vector.load %arg5[%c0_4, %c0_5] : memref<1x4xf32, #tpu.memory_space<vmem>>, vector<1x4xf32>
    %5 = vector.broadcast %4 : vector<1x4xf32> to vector<256x4xf32>
    %6 = arith.addf %3, %5 : vector<256x4xf32>
    %cst_6 = arith.constant 0.000000e+00 : f32
    %7 = vector.broadcast %cst_6 : f32 to vector<256x4xf32>
    %8 = arith.maximumf %6, %7 : vector<256x4xf32>
    %c0_7 = arith.constant 0 : index
    %c0_8 = arith.constant 0 : index
    %c0_9 = arith.constant 0 : index
    %9 = vector.load %arg6[%c0_7, %c0_8, %c0_9] : memref<1x256x1xf32, #tpu.memory_space<vmem>>, vector<1x256x1xf32>
    %10 = vector.shape_cast %9 : vector<1x256x1xf32> to vector<256x1xf32>
    %11 = vector.broadcast %10 : vector<256x1xf32> to vector<256x4xf32>
    %12 = arith.mulf %11, %8 : vector<256x4xf32>
    %c0_10 = arith.constant 0 : index
    %c0_11 = arith.constant 0 : index
    %c0_12 = arith.constant 0 : index
    %13 = vector.load %arg7[%c0_10, %c0_11, %c0_12] : memref<1x1x4xf32, #tpu.memory_space<vmem>>, vector<1x1x4xf32>
    %14 = vector.shape_cast %13 : vector<1x1x4xf32> to vector<1x4xf32>
    %15 = vector.broadcast %14 : vector<1x4xf32> to vector<256x4xf32>
    %16 = arith.addf %12, %15 : vector<256x4xf32>
    %c0_13 = arith.constant 0 : index
    %c0_14 = arith.constant 0 : index
    %c0_15 = arith.constant 0 : index
    %17 = vector.load %arg8[%c0_13, %c0_14, %c0_15] : memref<1x256x4xf32, #tpu.memory_space<vmem>>, vector<1x256x4xf32>
    %18 = vector.shape_cast %17 : vector<1x256x4xf32> to vector<256x4xf32>
    %19 = vector.shape_cast %16 : vector<256x4xf32> to vector<1x256x4xf32>
    tpu.vector_store %arg8[%c0_13, %c0_14, %c0_15], %19 {strides = array<i32>} : memref<1x256x4xf32, #tpu.memory_space<vmem>>, vector<1x256x4xf32>,
    return
  }
  func.func @transform_0(%arg0: i32, %arg1: i32, %arg2: i32) -> (i32, i32, i32) {
    %c0_i32 = arith.constant 0 : i32
    %c0_i32_0 = arith.constant 0 : i32
    return %arg0, %arg1, %c0_i32 : i32, i32, i32
  }
  func.func @transform_1(%arg0: i32, %arg1: i32, %arg2: i32) -> (i32, i32) {
    %c0_i32 = arith.constant 0 : i32
    %c0_i32_0 = arith.constant 0 : i32
    return %c0_i32, %arg2 : i32, i32
  }
  func.func @transform_2(%arg0: i32, %arg1: i32, %arg2: i32) -> (i32, i32) {
    %c0_i32 = arith.constant 0 : i32
    %c0_i32_0 = arith.constant 0 : i32
    return %c0_i32, %arg2 : i32, i32
  }
  func.func @transform_3(%arg0: i32, %arg1: i32, %arg2: i32) -> (i32, i32, i32) {
    %c0_i32 = arith.constant 0 : i32
    %c0_i32_0 = arith.constant 0 : i32
    return %arg0, %arg1, %c0_i32 : i32, i32, i32
  }
  func.func @transform_4(%arg0: i32, %arg1: i32, %arg2: i32) -> (i32, i32, i32) {
    %c0_i32 = arith.constant 0 : i32
    %c0_i32_0 = arith.constant 0 : i32
    return %arg0, %c0_i32, %arg2 : i32, i32, i32
  }
  func.func @transform_5(%arg0: i32, %arg1: i32, %arg2: i32) -> (i32, i32, i32) {
    %c0_i32 = arith.constant 0 : i32
    return %arg0, %arg1, %arg2 : i32, i32, i32
  }
}

</mosaic_0001>

<bundles_post_ra>
// kernel: fpa_forward.2
= control target key start
LH: loop header
LB: loop body
LE: loop exit
PB: predicated region body
PF: predicated region fallthrough
CT: control target
= control target key end

     0   :  { %s641_s12 = smov 0   ;;  %s643_s13 = smov 0   ;;  %s687_s0 = inlined_call_operand.vmem [shape: bf16[2,256,4], index: 0, kind: input, shape index: {}]   ;;  %s688_s1 = inlined_call_operand.vmem [shape: bf16[4,4], index: 1, kind: input, shape index: {}]   ;;  %s689_s2 = inlined_call_operand.vmem [shape: f32[1,4], index: 2, kind: input, shape index: {}]   ;;  %s690_s3 = inlined_call_operand.vmem [shape: f32[2,1,4], index: 3, kind: output, shape index: {}]  }
   0x1   :  { %s645_s14 = smov 0  }
   0x2 LB: > { %s25_s15 = sadd.s32 1, %s612_s13  ;;  %p498_p0 = scmp.ge.s32.totalorder %s616_s14, 1  ;;  %s616_s14 = sphi %s645_s14, %s13_s14   ;;  %s612_s13 = sphi %s643_s13, %s692_s13   ;;  %s608_s12 = sphi %s641_s12, %s691_s12  }
   0x3   : > { %p27_p1 = scmp.ge.s32.totalorder %s25_s15, 2  ;;  %p156_p2 = scmp.lt.s32.totalorder %s616_s14, 3 }
   0x5   : > { %s694_s15 = smov (%p27_p1, %s25_s15), 0  ;;  %p157_p3 = pnand %p498_p0, %p156_p2 }
   0x6   : > { %p183_p4 = scmp.lt.s32.totalorder (!%p157_p3), %s608_s12, 1  ;;  %v618_v0 = vmov (!%p157_p3), 1065369472   ;;  %vm201_vm0 = vcmask (!%p157_p3), 24576   ;;  %v619_v17 = vmov (!%p157_p3), 0.0   ;;  %vm387_vm1 = vcmask (!%p157_p3), 1041408  }
   0x7   : > { %160 = sbr.rel (%p157_p3) target bundleno = 496 (0x1f0), region = 32  ;;  %364 = vmatprep.mubr.bf16.mxu0 (!%p157_p3), %v618_v0  ;;  %202 = vst.msk [vmem:[#allocation2] sm:$0x1] (!%p157_p3), %vm201_vm0, %v619_v17  ;;  %545 = vmatprep.subr.bf16.mxu1 (!%p157_p3), %v619_v17  ;;  %v381_v18 = vld [vmem:[%s688_s1] sm:$0x3] (!%p157_p3)  ;;  %vm620_vm2 = vmmov (!%p157_p3), 0  }
   0x8   : > { %v389_v19 = vsel (!%p157_p3), %vm387_vm1, %v381_v18, 0  ;;  %547 = vmatprep.mubr.msk.bf16.mxu1 (!%p157_p3), %vm620_vm2, %v619_v17  ;;  %vm383_vm3 = vcmask (!%p157_p3), 31744   ;;  %v382_v30 = vld [vmem:[%s689_s2] sm:$0x1] (!%p157_p3) }
   0x9   : > { %546 = vmatpush3.bf16.msra.mxu1 (!%p157_p3), %v389_v19 }
   0xe   : > { %s696_s12 = smov (!%p183_p4, %s608_s12), 1  ;;  %v235_v22 = vld [vmem:[#allocation2] sm:$0x1] }
   0xf   : > { %s520_s16 = sshll.u32 %s696_s12, 7  ;;  %s194_s26 = scalar_lea.vmem %s690_s3, %s696_s12 }
  0x10   : > { %s190_s19 = scalar_lea.vmem %s687_s0, %s520_s16 }
  0x11   : > { %v578_v1 = vld [vmem:[%s190_s19 + $0x40] sm:$0xff]   ;;  %v580_v3 = vld [vmem:[%s190_s19 + $0x48] sm:$0xff]   ;;  %v582_v5 = vld [vmem:[%s190_s19 + $0x50] sm:$0xff]  }
  0x12   : > { %v579_v2 = vld [vmem:[%s190_s19] sm:$0xff]   ;;  %521 = vmatprep.subr.bf16.mxu0 %v578_v1  ;;  %v581_v4 = vld [vmem:[%s190_s19 + $0x8] sm:$0xff]   ;;  %v583_v6 = vld [vmem:[%s190_s19 + $0x10] sm:$0xff]  }
  0x13   : > { %522 = vmatpush3.bf16.msra.mxu0 %v579_v2  ;;  %v584_v7 = vld [vmem:[%s190_s19 + $0x58] sm:$0xff]   ;;  %v586_v9 = vld [vmem:[%s190_s19 + $0x60] sm:$0xff]   ;;  %v588_v11 = vld [vmem:[%s190_s19 + $0x68] sm:$0xff]  }
  0x14   : > { %523 = vmatprep.subr.bf16.mxu0 %v580_v3  ;;  %v585_v8 = vld [vmem:[%s190_s19 + $0x18] sm:$0xff]   ;;  %v587_v10 = vld [vmem:[%s190_s19 + $0x20] sm:$0xff]   ;;  %v589_v12 = vld [vmem:[%s190_s19 + $0x28] sm:$0xff]  }
  0x15   : > { %v590_v13 = vld [vmem:[%s190_s19 + $0x70] sm:$0xff]   ;;  %v592_v15 = vld [vmem:[%s190_s19 + $0x78] sm:$0xff]  }
  0x16   : > { %v591_v14 = vld [vmem:[%s190_s19 + $0x30] sm:$0xff]   ;;  %v593_v16 = vld [vmem:[%s190_s19 + $0x38] sm:$0xff]  }
  0x17   : > { %524 = vmatpush3.bf16.msra.mxu0 %v581_v4 }
  0x18   : > { %525 = vmatprep.subr.bf16.mxu0 %v582_v5 }
  0x1b   : > { %526 = vmatpush3.bf16.msra.mxu0 %v583_v6 }
  0x1c   : > { %527 = vmatprep.subr.bf16.mxu0 %v584_v7 }
  0x1f   : > { %528 = vmatpush3.bf16.msra.mxu0 %v585_v8 }
  0x20   : > { %529 = vmatprep.subr.bf16.mxu0 %v586_v9 }
  0x23   : > { %530 = vmatpush3.bf16.msra.mxu0 %v587_v10 }
  0x24   : > { %531 = vmatprep.subr.bf16.mxu0 %v588_v11 }
  0x27   : > { %532 = vmatpush3.bf16.msra.mxu0 %v589_v12 }
  0x28   : > { %533 = vmatprep.subr.bf16.mxu0 %v590_v13 }
  0x2b   : > { %534 = vmatpush3.bf16.msra.mxu0 %v591_v14 }
  0x2c   : > { %535 = vmatprep.subr.bf16.mxu0 %v592_v15 }
  0x2f   : > { %536 = vmatpush3.bf16.msra.mxu0 %v593_v16 }
  0x32   : > { %365 = vmatmul.mubr.bf16.vlgmr.msra.gmra.mrb[0].mxu0 %v618_v0 }
 0x105   : > { %v537_v20 = vpop.f32.mrb[0].mxu0 }
 0x106   : > { %v538_v21 = vpop.f32.mrb[1].mxu0 }
 0x107   : > { %v539_v23 = vadd.f32 %v538_v21, %v537_v20  ;;  %v540_v24 = vpop.f32.mrb[2].mxu0 }
 0x108   : > { %v541_v25 = vpop.f32.mrb[3].mxu0 }
 0x109   : > { %v372_v26 = vadd.f32 %v539_v23, %v235_v22 }
 0x10b   : > { %374 = vst.msk [vmem:[#allocation2] sm:$0x1] %vm201_vm0, %v372_v26 }
 0x112   : > { %v378_v27 = vld [vmem:[#allocation2] sm:$0x1] }
 0x113   : > { %v379_v28 = vmul.f32 0.00390625, %v378_v27 }
 0x115   : > { %v380_v29 = vpack.c.bf16 %v379_v28, %v379_v28 }
 0x117   : > { %548 = vmatmul.mubr.msk.bf16.vlgmr.msra.gmra.mrb[0].mxu1 %vm383_vm3, %v380_v29 }
 0x1ea   : > { %v425_v31 = vpop.f32.mrb[0].mxu1 }
 0x1eb   : > { %v426_v32 = vadd.f32 %v425_v31, %v382_v30  ;;  %v549_v33 = vpop.f32.mrb[1].mxu1 }
 0x1ec   : > { %v428_v34 = vpop.f32.mrb[2].mxu1 }
 0x1ed   : > { %v431_v35 = vmax.f32 %v426_v32, 0.0  ;;  %v550_v36 = vpop.f32.mrb[3].mxu1 }
 0x1ef   : > { %432 = vst.msk [vmem:[%s194_s26] sm:$0x1] %vm201_vm0, %v431_v35 }
 0x1f0 PF: > { %s13_s14 = sadd.s32 1, %s616_s14   ;;  %s691_s12 = smov %s612_s13 }
 0x1f1   : > { %p10_p5 = scmp.ge.s32.totalorder %s13_s14, 4   ;;  %s692_s13 = smov %s694_s15 }
 0x1f3   :  { %12 = sbr.rel (!%p10_p5) target bundleno = 2 (0x2), region = 70 }

// kernel: fpa_forward.3
= control target key start
LH: loop header
LB: loop body
LE: loop exit
PB: predicated region body
PF: predicated region fallthrough
CT: control target
= control target key end

     0   :  { %s1395_s18 = smov 0   ;;  %s1397_s19 = smov 0   ;;  %s1705_s0 = inlined_call_operand.vmem [shape: bf16[2,256,4], index: 0, kind: input, shape index: {}]   ;;  %s1706_s1 = inlined_call_operand.vmem [shape: bf16[4,4], index: 1, kind: input, shape index: {}]   ;;  %s1707_s2 = inlined_call_operand.vmem [shape: f32[1,4], index: 2, kind: input, shape index: {}]   ;;  %s1708_s3 = inlined_call_operand.vmem [shape: f32[2,256,1], index: 3, kind: input, shape index: {}]   ;;  %s1709_s4 = inlined_call_operand.vmem [shape: f32[2,1,4], index: 4, kind: input, shape index: {}]   ;;  %s1710_s5 = inlined_call_operand.vmem [shape: f32[2,256,4], index: 5, kind: output, shape index: {}]  }
   0x1   :  { %s1399_s20 = smov 0  }
   0x2 LB: > { %s34_s21 = sadd.s32 1, %s1358_s19  ;;  %p1196_p0 = scmp.ge.s32.totalorder %s1362_s20, 1  ;;  %s1362_s20 = sphi %s1399_s20, %s15_s20   ;;  %s1358_s19 = sphi %s1397_s19, %s1712_s19   ;;  %s1354_s18 = sphi %s1395_s18, %s1711_s18  }
   0x3   : > { %p36_p1 = scmp.ge.s32.totalorder %s34_s21, 2  ;;  %p264_p2 = scmp.lt.s32.totalorder %s1362_s20, 3 }
   0x5   : > { %s1714_s21 = smov (%p36_p1, %s34_s21), 0  ;;  %p265_p3 = pnand %p1196_p0, %p264_p2 }
   0x6   : > { %v404_v0 = vld [vmem:[%s1706_s1] sm:$0x3] (!%p265_p3)  ;;  %vm541_vm0 = vcmask (!%p265_p3), 1041408   ;;  %p326_p4 = scmp.lt.s32.totalorder (!%p265_p3), %s1354_s18, 1  ;;  %v1364_v1 = vmov (!%p265_p3), 0   ;;  %vm492_vm1 = vcmask (!%p265_p3), 31744  }
   0x7   : > { %268 = sbr.rel (%p265_p3) target bundleno = 269 (0x10d), region = 40  ;;  %1323 = vset.pattern.permute.xlu1 (!%p265_p3), %v1364_v1  ;;  %1322 = vset.pattern.permute.xlu0 (!%p265_p3), %v1364_v1  ;;  %v543_v2 = vsel (!%p265_p3), %vm541_vm0, %v404_v0, 0 }
   0x8   : > { %1295 = vmatprep.subr.msk.bf16.mxu0 (!%p265_p3), %vm541_vm0, %v404_v0  ;;  %1296 = vmatprep.subr.msk.bf16.mxu1 (!%p265_p3), %vm541_vm0, %v404_v0 }
   0x9   : > { %1260 = vmatpush3.bf16.msra.mxu0 (!%p265_p3), %v543_v2  ;;  %1294 = vmatpush3.bf16.msra.mxu1 (!%p265_p3), %v543_v2 }
   0xe   : > { %s1716_s18 = smov (!%p326_p4, %s1354_s18), 1 }
   0xf   : > { %s1240_s24 = sshll.u32 %s1716_s18, 8  ;;  %s1239_s25 = sshll.u32 %s1716_s18, 7 }
  0x10   : > { %s1425_s28 = scalar_lea.vmem %s1708_s3, %s1240_s24  ;;  %s1432_s6 = scalar_lea.vmem %s1705_s0, %s1239_s25 }
  0x11   : > { %v740_v3 = vld [vmem:[%s1425_s28 + $0x10] sm:$0xff]  ;;  %v738_v4 = vld [vmem:[%s1425_s28] sm:$0xff]  ;;  %v741_v5 = vld [vmem:[%s1425_s28 + $0x18] sm:$0xff]  ;;  %s357_s11 = scalar_lea.vmem %s1709_s4, %s1716_s18  ;;  %s1552_s14 = scalar_lea.vmem %s1710_s5, %s1240_s24 }
  0x12   : > { %782 = vperm.xlu1 %1323, %v740_v3   ;;  %772 = vperm.xlu0 %1322, %v738_v4   ;;  %v1324_v6 = vld [vmem:[%s1432_s6] sm:$0xff]   ;;  %v1326_v8 = vld [vmem:[%s1432_s6 + $0x8] sm:$0xff]   ;;  %v1328_v13 = vld [vmem:[%s1432_s6 + $0x10] sm:$0xff]  }
  0x13   : > { %v1325_v7 = vld [vmem:[%s1432_s6 + $0x40] sm:$0xff]   ;;  %1261 = vmatprep.mubr.msk.bf16.mxu0 %vm492_vm1, %v1324_v6  ;;  %v1327_v9 = vld [vmem:[%s1432_s6 + $0x48] sm:$0xff]   ;;  %v1329_v14 = vld [vmem:[%s1432_s6 + $0x50] sm:$0xff]  }
  0x14   : > { %1277 = vmatprep.mubr.msk.bf16.mxu1 %vm492_vm1, %v1325_v7  ;;  %1262 = vmatmul.mubr.msk.bf16.vlgmr.msra.gmra.mrb[0].mxu0 %vm492_vm1, %v1326_v8  ;;  %v739_v10 = vld [vmem:[%s1425_s28 + $0x8] sm:$0xff]  ;;  %v742_v12 = vld [vmem:[%s1425_s28 + $0x20] sm:$0xff]  ;;  %v1330_v15 = vld [vmem:[%s1432_s6 + $0x18] sm:$0xff]  }
  0x15   : > { %v743_v11 = vld [vmem:[%s1425_s28 + $0x28] sm:$0xff]  ;;  %1278 = vmatmul.mubr.msk.bf16.vlgmr.msra.gmra.mrb[0].mxu1 %vm492_vm1, %v1327_v9  ;;  %1265 = vmatprep.mubr.msk.bf16.mxu0 %vm492_vm1, %v1328_v13  ;;  %v1331_v16 = vld [vmem:[%s1432_s6 + $0x58] sm:$0xff]   ;;  %v744_v18 = vld [vmem:[%s1425_s28 + $0x30] sm:$0xff] }
  0x16   : > { %787 = vperm.xlu1 %1323, %v741_v5   ;;  %777 = vperm.xlu0 %1322, %v739_v10   ;;  %v745_v17 = vld [vmem:[%s1425_s28 + $0x38] sm:$0xff]  ;;  %v1332_v19 = vld [vmem:[%s1432_s6 + $0x20] sm:$0xff]   ;;  %v747_v21 = vld [vmem:[%s1425_s28 + $0x48] sm:$0xff] }
  0x17   : > { %1281 = vmatprep.mubr.msk.bf16.mxu1 %vm492_vm1, %v1329_v14  ;;  %v1333_v20 = vld [vmem:[%s1432_s6 + $0x60] sm:$0xff]   ;;  %v1334_v23 = vld [vmem:[%s1432_s6 + $0x28] sm:$0xff]   ;;  %v749_v25 = vld [vmem:[%s1425_s28 + $0x58] sm:$0xff] }
  0x18   : > { %v746_v22 = vld [vmem:[%s1425_s28 + $0x40] sm:$0xff]  ;;  %v1335_v24 = vld [vmem:[%s1432_s6 + $0x68] sm:$0xff]   ;;  %v748_v26 = vld [vmem:[%s1425_s28 + $0x50] sm:$0xff] }
  0x19   : > { %v1336_v27 = vld [vmem:[%s1432_s6 + $0x30] sm:$0xff]   ;;  %v751_v29 = vld [vmem:[%s1425_s28 + $0x68] sm:$0xff]  ;;  %v750_v30 = vld [vmem:[%s1425_s28 + $0x60] sm:$0xff] }
  0x1a   : > { %797 = vperm.xlu1 %1323, %v743_v11   ;;  %792 = vperm.xlu0 %1322, %v742_v12   ;;  %v1337_v28 = vld [vmem:[%s1432_s6 + $0x70] sm:$0xff]   ;;  %v1338_v31 = vld [vmem:[%s1432_s6 + $0x38] sm:$0xff]   ;;  %v755_v35 = vld [vmem:[%s1425_s28 + $0x88] sm:$0xff] }
  0x1b   : > { %v1339_v32 = vld [vmem:[%s1432_s6 + $0x78] sm:$0xff]   ;;  %v752_v34 = vld [vmem:[%s1425_s28 + $0x70] sm:$0xff]  ;;  %v754_v36 = vld [vmem:[%s1425_s28 + $0x80] sm:$0xff] }
  0x1c   : > { %1266 = vmatmul.mubr.msk.bf16.gmra.mrb[4].mxu0 %vm492_vm1, %v1330_v15  ;;  %v753_v33 = vld [vmem:[%s1425_s28 + $0x78] sm:$0xff]  ;;  %v756_v38 = vld [vmem:[%s1425_s28 + $0x90] sm:$0xff]  ;;  %v759_v39 = vld [vmem:[%s1425_s28 + $0xa8] sm:$0xff] }
  0x1d   : > { %1282 = vmatmul.mubr.msk.bf16.gmra.mrb[4].mxu1 %vm492_vm1, %v1331_v16  ;;  %1269 = vmatprep.mubr.msk.bf16.mxu0 %vm492_vm1, %v1332_v19  ;;  %v757_v37 = vld [vmem:[%s1425_s28 + $0x98] sm:$0xff]  ;;  %v758_v40 = vld [vmem:[%s1425_s28 + $0xa0] sm:$0xff]  ;;  %v760_v42 = vld [vmem:[%s1425_s28 + $0xb0] sm:$0xff] }
  0x1e   : > { %807 = vperm.xlu1 %1323, %v745_v17   ;;  %802 = vperm.xlu0 %1322, %v744_v18   ;;  %v761_v41 = vld [vmem:[%s1425_s28 + $0xb8] sm:$0xff]  ;;  %v763_v43 = vld [vmem:[%s1425_s28 + $0xc8] sm:$0xff]  ;;  %v762_v44 = vld [vmem:[%s1425_s28 + $0xc0] sm:$0xff] }
  0x1f   : > { %1285 = vmatprep.mubr.msk.bf16.mxu1 %vm492_vm1, %v1333_v20  ;;  %v765_v45 = vld [vmem:[%s1425_s28 + $0xd8] sm:$0xff]  ;;  %v764_v46 = vld [vmem:[%s1425_s28 + $0xd0] sm:$0xff]  ;;  %v767_v47 = vld [vmem:[%s1425_s28 + $0xe8] sm:$0xff] }
  0x20   : > { %v766_v48 = vld [vmem:[%s1425_s28 + $0xe0] sm:$0xff]  ;;  %v769_v49 = vld [vmem:[%s1425_s28 + $0xf8] sm:$0xff]  ;;  %v768_v50 = vld [vmem:[%s1425_s28 + $0xf0] sm:$0xff] }
  0x21   : > { %v1527_v9 = vld [vmem:[%s1707_s2] ss:$0 sm:$0xff] }
  0x22   : > { %817 = vperm.xlu1 %1323, %v747_v21   ;;  %812 = vperm.xlu0 %1322, %v746_v22  }
  0x24   : > { %1270 = vmatmul.mubr.msk.bf16.gmra.mrb[8].mxu0 %vm492_vm1, %v1334_v23 }
  0x25   : > { %1286 = vmatmul.mubr.msk.bf16.gmra.mrb[8].mxu1 %vm492_vm1, %v1335_v24  ;;  %1273 = vmatprep.mubr.msk.bf16.mxu0 %vm492_vm1, %v1336_v27 }
  0x26   : > { %827 = vperm.xlu1 %1323, %v749_v25   ;;  %822 = vperm.xlu0 %1322, %v748_v26   ;;  %v1542_v25 = vld [vmem:[%s357_s11] ss:$0 sm:$0xff] }
  0x27   : > { %1289 = vmatprep.mubr.msk.bf16.mxu1 %vm492_vm1, %v1337_v28 }
  0x2a   : > { %837 = vperm.xlu1 %1323, %v751_v29   ;;  %832 = vperm.xlu0 %1322, %v750_v30  }
  0x2c   : > { %1274 = vmatmul.mubr.msk.bf16.gmra.mrb[12].mxu0 %vm492_vm1, %v1338_v31 }
  0x2d   : > { %1290 = vmatmul.mubr.msk.bf16.gmra.mrb[12].mxu1 %vm492_vm1, %v1339_v32 }
  0x2e   : > { %847 = vperm.xlu1 %1323, %v753_v33   ;;  %842 = vperm.xlu0 %1322, %v752_v34  }
  0x32   : > { %857 = vperm.xlu1 %1323, %v755_v35   ;;  %852 = vperm.xlu0 %1322, %v754_v36  }
  0x36   : > { %867 = vperm.xlu1 %1323, %v757_v37   ;;  %862 = vperm.xlu0 %1322, %v756_v38  }
  0x3a   : > { %877 = vperm.xlu1 %1323, %v759_v39   ;;  %872 = vperm.xlu0 %1322, %v758_v40  }
  0x3e   : > { %887 = vperm.xlu1 %1323, %v761_v41   ;;  %882 = vperm.xlu0 %1322, %v760_v42  }
  0x42   : > { %897 = vperm.xlu1 %1323, %v763_v43   ;;  %892 = vperm.xlu0 %1322, %v762_v44  }
  0x46   : > { %907 = vperm.xlu1 %1323, %v765_v45   ;;  %902 = vperm.xlu0 %1322, %v764_v46  }
  0x4a   : > { %917 = vperm.xlu1 %1323, %v767_v47   ;;  %912 = vperm.xlu0 %1322, %v766_v48  }
  0x4e   : > { %927 = vperm.xlu1 %1323, %v769_v49   ;;  %922 = vperm.xlu0 %1322, %v768_v50  }
  0x91   : > { %v783_v51 = vpop.permute.xlu1 %782  ;;  %v773_v52 = vpop.permute.xlu0 %772 }
  0x95   : > { %v788_v53 = vpop.permute.xlu1 %787  ;;  %v778_v54 = vpop.permute.xlu0 %777 }
  0x99   : > { %v1496_v55 = vpop.permute.xlu1 %797  ;;  %v1498_v56 = vpop.permute.xlu0 %792 }
  0x9d   : > { %v1500_v57 = vpop.permute.xlu1 %807  ;;  %v1502_v58 = vpop.permute.xlu0 %802 }
  0xa1   : > { %v1504_v59 = vpop.permute.xlu1 %817  ;;  %v1506_v60 = vpop.permute.xlu0 %812 }
  0xa5   : > { %v1508_v61 = vpop.permute.xlu1 %827  ;;  %v1510_v62 = vpop.permute.xlu0 %822 }
  0xa9   : > { %v1512_v63 = vpop.permute.xlu1 %837  ;;  %v1514_v0 = vpop.permute.xlu0 %832 }
  0xad   : > { %v1516_v1 = vpop.permute.xlu1 %847  ;;  %v1518_v2 = vpop.permute.xlu0 %842 }
  0xb1   : > { %v858_v3 = vpop.permute.xlu1 %857  ;;  %v853_v4 = vpop.permute.xlu0 %852 }
  0xb5   : > { %v868_v5 = vpop.permute.xlu1 %867  ;;  %v863_v6 = vpop.permute.xlu0 %862 }
  0xb9   : > { %v1520_v7 = vpop.permute.xlu1 %877  ;;  %v1522_v8 = vpop.permute.xlu0 %872 }
  0xbd   : > { %v1529_v10 = vpop.permute.xlu1 %887  ;;  %v1531_v11 = vpop.permute.xlu0 %882 }
  0xc1   : > { %v1554_v39 = vpop.permute.xlu1 %897  ;;  %v1557_v44 = vpop.permute.xlu0 %892 }
  0xe7   : > { %v1263_v12 = vpop.f32.mrb[0].mxu0 }
  0xe8   : > { %v588_v13 = vadd.f32 %v1263_v12, %v1527_v9  ;;  %v1279_v14 = vpop.f32.mrb[0].mxu1  ;;  %v579_v15 = vpop.f32.mrb[1].mxu0 }
  0xe9   : > { %v652_v16 = vadd.f32 %v1279_v14, %v1527_v9  ;;  %v580_v17 = vadd.f32 %v1527_v9, %v579_v15  ;;  %v643_v18 = vpop.f32.mrb[1].mxu1  ;;  %v1264_v19 = vpop.f32.mrb[2].mxu0 }
  0xea   : > { %v708_v20 = vmax.f32 %v588_v13, 0.0  ;;  %v644_v21 = vadd.f32 %v1527_v9, %v643_v18  ;;  %v591_v22 = vadd.f32 %v1264_v19, %v1527_v9  ;;  %v1280_v23 = vpop.f32.mrb[2].mxu1  ;;  %v582_v24 = vpop.f32.mrb[3].mxu0 }
  0xeb   : > { %v724_v26 = vmax.f32 %v652_v16, 0.0  ;;  %v706_v27 = vmax.f32 %v580_v17, 0.0  ;;  %v655_v28 = vadd.f32 %v1280_v23, %v1527_v9  ;;  %v583_v29 = vadd.f32 %v1527_v9, %v582_v24  ;;  %v646_v30 = vpop.f32.mrb[3].mxu1 }
  0xec   : > { %v932_v31 = vmul.f32 %v783_v51, %v708_v20  ;;  %v722_v32 = vmax.f32 %v644_v21, 0.0  ;;  %v709_v33 = vmax.f32 %v591_v22, 0.0  ;;  %v647_v34 = vadd.f32 %v1527_v9, %v646_v30 }
  0xed   : > { %v948_v35 = vmul.f32 %v863_v6, %v724_v26  ;;  %v930_v36 = vmul.f32 %v773_v52, %v706_v27  ;;  %v725_v37 = vmax.f32 %v655_v28, 0.0  ;;  %v707_v38 = vmax.f32 %v583_v29, 0.0 }
  0xee   : > { %v971_v40 = vadd.f32 %v1542_v25, %v932_v31  ;;  %v946_v41 = vmul.f32 %v853_v4, %v722_v32  ;;  %v933_v42 = vmul.f32 %v788_v53, %v709_v33  ;;  %v723_v43 = vmax.f32 %v647_v34, 0.0 }
  0xef   : > { %v987_v45 = vadd.f32 %v1542_v25, %v948_v35  ;;  %v969_v46 = vadd.f32 %v1542_v25, %v930_v36  ;;  %v949_v47 = vmul.f32 %v868_v5, %v725_v37  ;;  %v931_v48 = vmul.f32 %v778_v54, %v707_v38  ;;  %v1267_v49 = vpop.f32.mrb[4].mxu0  ;;  %v908_v35 = vpop.permute.xlu1 %907 }
  0xf0   : > { %1003 = vst.msk [vmem:[%s1552_s14 + $0x10] sm:$0xff] %vm492_vm1, %v971_v40  ;;  %v985_v50 = vadd.f32 %v1542_v25, %v946_v41  ;;  %v972_v51 = vadd.f32 %v1542_v25, %v933_v42  ;;  %v947_v52 = vmul.f32 %v858_v3, %v723_v43  ;;  %v604_v53 = vadd.f32 %v1267_v49, %v1527_v9  ;;  %v1283_v4 = vpop.f32.mrb[4].mxu1  ;;  %v595_v6 = vpop.f32.mrb[5].mxu0 }
  0xf1   : > { %1019 = vst.msk [vmem:[%s1552_s14 + $0x90] sm:$0xff] %vm492_vm1, %v987_v45  ;;  %1001 = vst.msk [vmem:[%s1552_s14] sm:$0xff] %vm492_vm1, %v969_v46  ;;  %v988_v54 = vadd.f32 %v1542_v25, %v949_v47  ;;  %v970_v5 = vadd.f32 %v1542_v25, %v931_v48  ;;  %v668_v12 = vadd.f32 %v1283_v4, %v1527_v9  ;;  %v659_v14 = vpop.f32.mrb[5].mxu1  ;;  %v1268_v3 = vpop.f32.mrb[6].mxu0 }
  0xf2   : > { %v596_v13 = vadd.f32 %v1527_v9, %v595_v6  ;;  %1017 = vst.msk [vmem:[%s1552_s14 + $0x80] sm:$0xff] %vm492_vm1, %v985_v50  ;;  %1004 = vst.msk [vmem:[%s1552_s14 + $0x18] sm:$0xff] %vm492_vm1, %v972_v51  ;;  %v986_v15 = vadd.f32 %v1542_v25, %v947_v52  ;;  %v712_v16 = vmax.f32 %v604_v53, 0.0  ;;  %v660_v17 = vadd.f32 %v1527_v9, %v659_v14  ;;  %v1284_v19 = vpop.f32.mrb[6].mxu1  ;;  %v598_v20 = vpop.f32.mrb[7].mxu0 }
  0xf3   : > { %v607_v18 = vadd.f32 %v1268_v3, %v1527_v9  ;;  %1020 = vst.msk [vmem:[%s1552_s14 + $0x98] sm:$0xff] %vm492_vm1, %v988_v54  ;;  %1002 = vst.msk [vmem:[%s1552_s14 + $0x8] sm:$0xff] %vm492_vm1, %v970_v5  ;;  %v728_v21 = vmax.f32 %v668_v12, 0.0  ;;  %v671_v23 = vadd.f32 %v1284_v19, %v1527_v9  ;;  %v599_v24 = vadd.f32 %v1527_v9, %v598_v20  ;;  %v662_v26 = vpop.f32.mrb[7].mxu1  ;;  %v903_v40 = vpop.permute.xlu0 %902 }
  0xf4   : > { %v710_v22 = vmax.f32 %v596_v13, 0.0  ;;  %1018 = vst.msk [vmem:[%s1552_s14 + $0x88] sm:$0xff] %vm492_vm1, %v986_v15  ;;  %v936_v27 = vmul.f32 %v1502_v58, %v712_v16  ;;  %v726_v28 = vmax.f32 %v660_v17, 0.0  ;;  %v663_v30 = vadd.f32 %v1527_v9, %v662_v26 }
  0xf5   : > { %v713_v29 = vmax.f32 %v607_v18, 0.0  ;;  %v952_v31 = vmul.f32 %v1531_v11, %v728_v21  ;;  %v729_v33 = vmax.f32 %v671_v23, 0.0  ;;  %v711_v34 = vmax.f32 %v599_v24, 0.0 }
  0xf6   : > { %v934_v32 = vmul.f32 %v1498_v56, %v710_v22  ;;  %v975_v36 = vadd.f32 %v1542_v25, %v936_v27  ;;  %v950_v37 = vmul.f32 %v1522_v8, %v726_v28  ;;  %v727_v58 = vmax.f32 %v663_v30, 0.0 }
  0xf7   : > { %v937_v38 = vmul.f32 %v1500_v57, %v713_v29  ;;  %v991_v41 = vadd.f32 %v1542_v25, %v952_v31  ;;  %v953_v11 = vmul.f32 %v1529_v10, %v729_v33  ;;  %v935_v56 = vmul.f32 %v1496_v55, %v711_v34  ;;  %v1271_v43 = vpop.f32.mrb[8].mxu0  ;;  %v913_v24 = vpop.permute.xlu0 %912 }
  0xf8   : > { %v973_v42 = vadd.f32 %v1542_v25, %v934_v32  ;;  %1007 = vst.msk [vmem:[%s1552_s14 + $0x30] sm:$0xff] %vm492_vm1, %v975_v36  ;;  %v989_v8 = vadd.f32 %v1542_v25, %v950_v37  ;;  %v951_v45 = vmul.f32 %v1520_v7, %v727_v58  ;;  %v620_v46 = vadd.f32 %v1271_v43, %v1527_v9  ;;  %v1287_v47 = vpop.f32.mrb[8].mxu1  ;;  %v611_v48 = vpop.f32.mrb[9].mxu0 }
  0xf9   : > { %v976_v57 = vadd.f32 %v1542_v25, %v937_v38  ;;  %1023 = vst.msk [vmem:[%s1552_s14 + $0xb0] sm:$0xff] %vm492_vm1, %v991_v41  ;;  %v992_v55 = vadd.f32 %v1542_v25, %v953_v11  ;;  %v974_v10 = vadd.f32 %v1542_v25, %v935_v56  ;;  %v684_v49 = vadd.f32 %v1287_v47, %v1527_v9  ;;  %v675_v51 = vpop.f32.mrb[9].mxu1  ;;  %v1272_v7 = vpop.f32.mrb[10].mxu0 }
  0xfa   : > { %1005 = vst.msk [vmem:[%s1552_s14 + $0x20] sm:$0xff] %vm492_vm1, %v973_v42  ;;  %v612_v50 = vadd.f32 %v1527_v9, %v611_v48  ;;  %1021 = vst.msk [vmem:[%s1552_s14 + $0xa0] sm:$0xff] %vm492_vm1, %v989_v8  ;;  %v990_v52 = vadd.f32 %v1542_v25, %v951_v45  ;;  %v716_v53 = vmax.f32 %v620_v46, 0.0  ;;  %v676_v4 = vadd.f32 %v1527_v9, %v675_v51  ;;  %v1288_v54 = vpop.f32.mrb[10].mxu1  ;;  %v614_v5 = vpop.f32.mrb[11].mxu0 }
  0xfb   : > { %1008 = vst.msk [vmem:[%s1552_s14 + $0x38] sm:$0xff] %vm492_vm1, %v976_v57  ;;  %v623_v6 = vadd.f32 %v1272_v7, %v1527_v9  ;;  %1024 = vst.msk [vmem:[%s1552_s14 + $0xb8] sm:$0xff] %vm492_vm1, %v992_v55  ;;  %v732_v12 = vmax.f32 %v684_v49, 0.0  ;;  %v687_v14 = vadd.f32 %v1288_v54, %v1527_v9  ;;  %v615_v3 = vadd.f32 %v1527_v9, %v614_v5  ;;  %v678_v15 = vpop.f32.mrb[11].mxu1  ;;  %v918_v29 = vpop.permute.xlu1 %917 }
  0xfc   : > { %1006 = vst.msk [vmem:[%s1552_s14 + $0x28] sm:$0xff] %vm492_vm1, %v974_v10  ;;  %v714_v13 = vmax.f32 %v612_v50, 0.0  ;;  %1022 = vst.msk [vmem:[%s1552_s14 + $0xa8] sm:$0xff] %vm492_vm1, %v990_v52  ;;  %v940_v16 = vmul.f32 %v1510_v62, %v716_v53  ;;  %v730_v17 = vmax.f32 %v676_v4, 0.0  ;;  %v679_v19 = vadd.f32 %v1527_v9, %v678_v15  ;;  %v923_v10 = vpop.permute.xlu0 %922 }
  0xfd   : > { %v717_v18 = vmax.f32 %v623_v6, 0.0  ;;  %v956_v20 = vmul.f32 %v903_v40, %v732_v12  ;;  %v733_v22 = vmax.f32 %v687_v14, 0.0  ;;  %v715_v23 = vmax.f32 %v615_v3, 0.0 }
  0xfe   : > { %v938_v21 = vmul.f32 %v1506_v60, %v714_v13  ;;  %v979_v26 = vadd.f32 %v1542_v25, %v940_v16  ;;  %v954_v27 = vmul.f32 %v1557_v44, %v730_v17  ;;  %v731_v62 = vmax.f32 %v679_v19, 0.0 }
  0xff   : > { %v941_v28 = vmul.f32 %v1508_v61, %v717_v18  ;;  %v995_v30 = vadd.f32 %v1542_v25, %v956_v20  ;;  %v957_v32 = vmul.f32 %v908_v35, %v733_v22  ;;  %v939_v60 = vmul.f32 %v1504_v59, %v715_v23  ;;  %v1275_v33 = vpop.f32.mrb[12].mxu0  ;;  %v928_v54 = vpop.permute.xlu1 %927 }
 0x100   : > { %v977_v31 = vadd.f32 %v1542_v25, %v938_v21  ;;  %1011 = vst.msk [vmem:[%s1552_s14 + $0x50] sm:$0xff] %vm492_vm1, %v979_v26  ;;  %v993_v44 = vadd.f32 %v1542_v25, %v954_v27  ;;  %v955_v61 = vmul.f32 %v1554_v39, %v731_v62  ;;  %v636_v36 = vadd.f32 %v1275_v33, %v1527_v9  ;;  %v1291_v37 = vpop.f32.mrb[12].mxu1  ;;  %v627_v38 = vpop.f32.mrb[13].mxu0 }
 0x101   : > { %v980_v34 = vadd.f32 %v1542_v25, %v941_v28  ;;  %1027 = vst.msk [vmem:[%s1552_s14 + $0xd0] sm:$0xff] %vm492_vm1, %v995_v30  ;;  %v996_v59 = vadd.f32 %v1542_v25, %v957_v32  ;;  %v978_v35 = vadd.f32 %v1542_v25, %v939_v60  ;;  %v700_v58 = vadd.f32 %v1291_v37, %v1527_v9  ;;  %v691_v41 = vpop.f32.mrb[13].mxu1  ;;  %v1276_v39 = vpop.f32.mrb[14].mxu0 }
 0x102   : > { %1009 = vst.msk [vmem:[%s1552_s14 + $0x40] sm:$0xff] %vm492_vm1, %v977_v31  ;;  %v628_v40 = vadd.f32 %v1527_v9, %v627_v38  ;;  %1025 = vst.msk [vmem:[%s1552_s14 + $0xc0] sm:$0xff] %vm492_vm1, %v993_v44  ;;  %v994_v42 = vadd.f32 %v1542_v25, %v955_v61  ;;  %v720_v11 = vmax.f32 %v636_v36, 0.0  ;;  %v692_v56 = vadd.f32 %v1527_v9, %v691_v41  ;;  %v1292_v8 = vpop.f32.mrb[14].mxu1  ;;  %v630_v57 = vpop.f32.mrb[15].mxu0 }
 0x103   : > { %1012 = vst.msk [vmem:[%s1552_s14 + $0x58] sm:$0xff] %vm492_vm1, %v980_v34  ;;  %v639_v43 = vadd.f32 %v1276_v39, %v1527_v9  ;;  %1028 = vst.msk [vmem:[%s1552_s14 + $0xd8] sm:$0xff] %vm492_vm1, %v996_v59  ;;  %v736_v45 = vmax.f32 %v700_v58, 0.0  ;;  %v703_v47 = vadd.f32 %v1292_v8, %v1527_v9  ;;  %v631_v48 = vadd.f32 %v1527_v9, %v630_v57  ;;  %v694_v55 = vpop.f32.mrb[15].mxu1 }
 0x104   : > { %1010 = vst.msk [vmem:[%s1552_s14 + $0x48] sm:$0xff] %vm492_vm1, %v978_v35  ;;  %v718_v46 = vmax.f32 %v628_v40, 0.0  ;;  %1026 = vst.msk [vmem:[%s1552_s14 + $0xc8] sm:$0xff] %vm492_vm1, %v994_v42  ;;  %v944_v49 = vmul.f32 %v1518_v2, %v720_v11  ;;  %v734_v50 = vmax.f32 %v692_v56, 0.0  ;;  %v695_v7 = vadd.f32 %v1527_v9, %v694_v55 }
 0x105   : > { %v721_v51 = vmax.f32 %v639_v43, 0.0  ;;  %v960_v52 = vmul.f32 %v923_v10, %v736_v45  ;;  %v737_v4 = vmax.f32 %v703_v47, 0.0  ;;  %v719_v6 = vmax.f32 %v631_v48, 0.0 }
 0x106   : > { %v942_v53 = vmul.f32 %v1514_v0, %v718_v46  ;;  %v983_v5 = vadd.f32 %v1542_v25, %v944_v49  ;;  %v958_v12 = vmul.f32 %v913_v24, %v734_v50  ;;  %v735_v13 = vmax.f32 %v695_v7, 0.0 }
 0x107   : > { %v945_v2 = vmul.f32 %v1516_v1, %v721_v51  ;;  %v999_v14 = vadd.f32 %v1542_v25, %v960_v52  ;;  %v961_v0 = vmul.f32 %v928_v54, %v737_v4  ;;  %v943_v3 = vmul.f32 %v1512_v63, %v719_v6 }
 0x108   : > { %v981_v9 = vadd.f32 %v1542_v25, %v942_v53  ;;  %1015 = vst.msk [vmem:[%s1552_s14 + $0x70] sm:$0xff] %vm492_vm1, %v983_v5  ;;  %v997_v15 = vadd.f32 %v1542_v25, %v958_v12  ;;  %v959_v17 = vmul.f32 %v918_v29, %v735_v13 }
 0x109   : > { %v984_v16 = vadd.f32 %v1542_v25, %v945_v2  ;;  %1031 = vst.msk [vmem:[%s1552_s14 + $0xf0] sm:$0xff] %vm492_vm1, %v999_v14  ;;  %v1000_v1 = vadd.f32 %v1542_v25, %v961_v0  ;;  %v982_v18 = vadd.f32 %v1542_v25, %v943_v3 }
 0x10a   : > { %1013 = vst.msk [vmem:[%s1552_s14 + $0x60] sm:$0xff] %vm492_vm1, %v981_v9  ;;  %1029 = vst.msk [vmem:[%s1552_s14 + $0xe0] sm:$0xff] %vm492_vm1, %v997_v15  ;;  %v998_v63 = vadd.f32 %v1542_v25, %v959_v17 }
 0x10b   : > { %1016 = vst.msk [vmem:[%s1552_s14 + $0x78] sm:$0xff] %vm492_vm1, %v984_v16  ;;  %1032 = vst.msk [vmem:[%s1552_s14 + $0xf8] sm:$0xff] %vm492_vm1, %v1000_v1 }
 0x10c   : > { %1014 = vst.msk [vmem:[%s1552_s14 + $0x68] sm:$0xff] %vm492_vm1, %v982_v18  ;;  %1030 = vst.msk [vmem:[%s1552_s14 + $0xe8] sm:$0xff] %vm492_vm1, %v998_v63 }
 0x10d PF: > { %s15_s20 = sadd.s32 1, %s1362_s20   ;;  %s1711_s18 = smov %s1358_s19 }
 0x10e   : > { %p12_p5 = scmp.ge.s32.totalorder %s15_s20, 4   ;;  %s1712_s19 = smov %s1714_s21 }
 0x110   :  { %14 = sbr.rel (!%p12_p5) target bundleno = 2 (0x2), region = 82 }

</bundles_post_ra>
